<compile_context>
chip_gen: v7x
topology: tpu7x:2x2x1
jax: 0.10.0
libtpu: 0.0.40
codegen_flags: <defaults>
</compile_context>

<pallas_src>
import functools

import jax
import jax.numpy as jnp
from jax.experimental import pallas as pl
from jax.experimental.pallas import tpu as pltpu


def mlp_sig_kernel(x_ref, p_ref, o_ref, *, in_features):
    """x_ref: (TB, IN) bf16;  p_ref: (IN+3, H) f32 packed params;  o_ref: (TB, H) f32.

    Packed param slab rows:
      rows [0, IN)   : w1  (IN, H)
      row  IN        : b1  (1, H)
      row  IN + 1    : w2^T (1, H)
      row  IN + 2    : b2 broadcast across all H lanes (1, H)
    """
    IN = in_features
    w1_bf16 = p_ref[0:IN, :].astype(jnp.bfloat16)     # (IN, H)  MXU operand
    b1 = p_ref[IN:IN + 1, :]                          # (1, H)   f32
    w2t = p_ref[IN + 1:IN + 2, :]                     # (1, H)   f32
    b2_row = p_ref[IN + 2:IN + 3, :]                  # (1, H)   f32, all lanes == b2

    # l1 = x @ W1 + b1   -> (TB, H); single bf16 MXU matmul, f32 accumulation.
    l1 = jnp.dot(x_ref[...], w1_bf16,
                 preferred_element_type=jnp.float32) + b1

    # l2 (pre-bias) = l1 @ w2  as a VPU multiply + XLU lane reduction -> (TB, 1).
    l2 = jnp.sum(l1 * w2t, axis=-1, keepdims=True)

    # out = sigmoid(l1) * sigmoid(l2 + b2).  (TB,1) + (1,H) broadcast folds the
    # scalar bias in and broadcasts sigmoid(l2) across H lanes; EUP work is
    # effectively free next to the loads/stores.
    o_ref[...] = jax.nn.sigmoid(l1) * jax.nn.sigmoid(l2 + b2_row)


def pack_params(w1, b1, w2t, b2):
    """Pack (IN,H) w1, (1,H) b1, (1,H) w2^T, scalar b2 into one (IN+3, H) f32 slab."""
    IN, H = w1.shape
    b2_row = jnp.full((1, H), jnp.float32(b2).reshape(()), dtype=jnp.float32)
    return jnp.concatenate(
        [w1.astype(jnp.float32),
         b1.reshape(1, H).astype(jnp.float32),
         w2t.reshape(1, H).astype(jnp.float32),
         b2_row],
        axis=0,
    )


def model_forward(x_bf16, params):
    """x_bf16: (B, IN) bfloat16;  params: (IN+3, H) float32 packed slab."""
    B, IN = x_bf16.shape
    P, H = params.shape
    assert P == IN + 3

    # Batch tile: whole batch for small B; >=512-row tiles for realistic B.
    # (On v7x, with its 64 MiB VMEM, per-step bytes ~ 2*TILE_B*(IN*2 + H*4) stay
    # tiny even at TILE_B=512, so no explicit vmem_limit override is needed.)
    tile_b = B if B <= 512 else 512
    assert B % tile_b == 0, "pad the batch to a multiple of the tile on the wrapper side"
    grid = (B // tile_b,)

    cost = pl.CostEstimate(
        flops=2 * B * IN * H + 6 * B * H,
        transcendentals=2 * B * H,
        bytes_accessed=x_bf16.size * 2 + params.size * 4 + B * H * 4,
    )

    kernel = functools.partial(mlp_sig_kernel, in_features=IN)

    return pl.pallas_call(
        kernel,
        out_shape=jax.ShapeDtypeStruct((B, H), jnp.float32),
        grid_spec=pltpu.PrefetchScalarGridSpec(
            num_scalar_prefetch=0,
            grid=grid,
            in_specs=[
                pl.BlockSpec((tile_b, IN), lambda i: (i, 0)),  # x tile
                pl.BlockSpec((P, H), lambda i: (0, 0)),        # params, grid-resident
            ],
            out_specs=pl.BlockSpec((tile_b, H), lambda i: (i, 0)),
        ),
        compiler_params=pltpu.CompilerParams(
            dimension_semantics=("parallel",),
        ),
        cost_estimate=cost,
    )(x_bf16, params)


if __name__ == "__main__":
    B, IN, H = 8, 16, 32
    key = jax.random.PRNGKey(0)
    kx, kw1, kb1, kw2, kb2 = jax.random.split(key, 5)

    x = jax.random.normal(kx, (B, IN), dtype=jnp.float32)
    # Deterministic param init (uniform like torch Linear default, fixed seed).
    w1 = jax.random.uniform(kw1, (IN, H), minval=-1.0 / IN ** 0.5,
                            maxval=1.0 / IN ** 0.5, dtype=jnp.float32)
    b1 = jax.random.uniform(kb1, (1, H), minval=-1.0 / IN ** 0.5,
                            maxval=1.0 / IN ** 0.5, dtype=jnp.float32)
    # Second linear's weight kept in its transposed row form (1, H).
    w2t = jax.random.uniform(kw2, (1, H), minval=-1.0 / H ** 0.5,
                             maxval=1.0 / H ** 0.5, dtype=jnp.float32)
    b2 = jax.random.uniform(kb2, (1, 1), minval=-1.0 / H ** 0.5,
                            maxval=1.0 / H ** 0.5, dtype=jnp.float32)

    params = pack_params(w1, b1, w2t, b2)
    x_bf16 = x.astype(jnp.bfloat16)

    out = model_forward(x_bf16, params)
    jax.block_until_ready(out)
    assert out.shape == (B, H)

    # Reference 1: same math with the same bf16-rounded MXU operands (tight check).
    xr = x_bf16.astype(jnp.float32)
    w1r = w1.astype(jnp.bfloat16).astype(jnp.float32)
    l1 = xr @ w1r + b1
    l2 = l1 @ w2t.T + b2
    ref_bf16_ops = jax.nn.sigmoid(l1) * jax.nn.sigmoid(l2)
    assert jnp.allclose(out, ref_bf16_ops, atol=1e-4, rtol=1e-4)

    # Reference 2: the original full-f32 PyTorch module math (semantic check;
    # loose tolerance only reflects the bf16 MXU operand rounding).
    l1f = x @ w1 + b1
    l2f = l1f @ w2t.T + b2
    ref_f32 = jax.nn.sigmoid(l1f) * jax.nn.sigmoid(l2f)
    assert jnp.allclose(out, ref_f32, atol=2e-2, rtol=2e-2)

    print("KERNEL_OK")
</pallas_src>

<mosaic_0001>
module attributes {stable_mosaic.version = 11 : i64} {
  func.func @mlp_sig_kernel(%arg0: i32, %arg1: memref<8x16xbf16, #tpu.memory_space<vmem>>, %arg2: memref<19x32xf32, #tpu.memory_space<vmem>>, %arg3: memref<8x32xf32, #tpu.memory_space<vmem>>) attributes {dimension_semantics = [#tpu.dimension_semantics<parallel>], iteration_bounds = array<i64: 1>, scalar_prefetch = 0 : i64, scratch_operands = 0 : i64, tpu.core_type = #tpu.core_type<tc>, window_params = [{transform_indices = @transform_0, window_bounds = array<i64: 8, 16>}, {pipeline_mode = #tpu.pipeline_mode<synchronous>, transform_indices = @transform_1, window_bounds = array<i64: 19, 32>}, {transform_indices = @transform_2, window_bounds = array<i64: 8, 32>}]} {
    %c0 = arith.constant 0 : index
    %c0_0 = arith.constant 0 : index
    %0 = vector.load %arg2[%c0, %c0_0] : memref<19x32xf32, #tpu.memory_space<vmem>>, vector<16x32xf32>
    %1 = arith.truncf %0 : vector<16x32xf32> to vector<16x32xbf16>
    %c16 = arith.constant 16 : index
    %c0_1 = arith.constant 0 : index
    %2 = vector.load %arg2[%c16, %c0_1] : memref<19x32xf32, #tpu.memory_space<vmem>>, vector<1x32xf32>
    %c17 = arith.constant 17 : index
    %c0_2 = arith.constant 0 : index
    %3 = vector.load %arg2[%c17, %c0_2] : memref<19x32xf32, #tpu.memory_space<vmem>>, vector<1x32xf32>
    %c18 = arith.constant 18 : index
    %c0_3 = arith.constant 0 : index
    %4 = vector.load %arg2[%c18, %c0_3] : memref<19x32xf32, #tpu.memory_space<vmem>>, vector<1x32xf32>
    %c0_4 = arith.constant 0 : index
    %c0_5 = arith.constant 0 : index
    %5 = vector.load %arg1[%c0_4, %c0_5] : memref<8x16xbf16, #tpu.memory_space<vmem>>, vector<8x16xbf16>
    %cst = arith.constant dense<0.000000e+00> : vector<8x32xf32>
    %6 = tpu.matmul %5, %1, %cst {dimension_numbers = #tpu.dot_dimension_numbers<[1], [0], [0], [1], [0, 0, 1, 1], [], []>} : vector<8x16xbf16>, vector<16x32xbf16>, vector<8x32xf32> -> vector<8x32xf32>
    %7 = vector.broadcast %2 : vector<1x32xf32> to vector<8x32xf32>
    %8 = arith.addf %6, %7 : vector<8x32xf32>
    %9 = vector.broadcast %3 : vector<1x32xf32> to vector<8x32xf32>
    %10 = arith.mulf %8, %9 : vector<8x32xf32>
    %cst_6 = arith.constant dense<0.000000e+00> : vector<8xf32>
    %11 = vector.multi_reduction <add>, %10, %cst_6 [1] : vector<8x32xf32> to vector<8xf32>
    %12 = vector.shape_cast %11 : vector<8xf32> to vector<8x1xf32>
    %13 = arith.negf %8 : vector<8x32xf32>
    %14 = math.exp %13 : vector<8x32xf32>
    %cst_7 = arith.constant 1.000000e+00 : f32
    %15 = vector.broadcast %cst_7 : f32 to vector<8x32xf32>
    %16 = arith.addf %15, %14 : vector<8x32xf32>
    %17 = arith.divf %15, %16 : vector<8x32xf32>
    %18 = vector.broadcast %12 : vector<8x1xf32> to vector<8x32xf32>
    %19 = vector.broadcast %4 : vector<1x32xf32> to vector<8x32xf32>
    %20 = arith.addf %18, %19 : vector<8x32xf32>
    %21 = arith.negf %20 : vector<8x32xf32>
    %22 = math.exp %21 : vector<8x32xf32>
    %cst_8 = arith.constant 1.000000e+00 : f32
    %23 = vector.broadcast %cst_8 : f32 to vector<8x32xf32>
    %24 = arith.addf %23, %22 : vector<8x32xf32>
    %25 = arith.divf %23, %24 : vector<8x32xf32>
    %26 = arith.mulf %17, %25 : vector<8x32xf32>
    %c0_9 = arith.constant 0 : index
    %c0_10 = arith.constant 0 : index
    %27 = vector.load %arg3[%c0_9, %c0_10] : memref<8x32xf32, #tpu.memory_space<vmem>>, vector<8x32xf32>
    tpu.vector_store %arg3[%c0_9, %c0_10], %26 {strides = array<i32>} : memref<8x32xf32, #tpu.memory_space<vmem>>, vector<8x32xf32>,
    return
  }
  func.func @transform_0(%arg0: i32) -> (i32, i32) {
    %c0_i32 = arith.constant 0 : i32
    %c0_i32_0 = arith.constant 0 : i32
    return %arg0, %c0_i32 : i32, i32
  }
  func.func @transform_1(%arg0: i32) -> (i32, i32) {
    %c0_i32 = arith.constant 0 : i32
    %c0_i32_0 = arith.constant 0 : i32
    %c0_i32_1 = arith.constant 0 : i32
    return %c0_i32, %c0_i32_0 : i32, i32
  }
  func.func @transform_2(%arg0: i32) -> (i32, i32) {
    %c0_i32 = arith.constant 0 : i32
    %c0_i32_0 = arith.constant 0 : i32
    return %arg0, %c0_i32 : i32, i32
  }
}

</mosaic_0001>

<bundles_post_ra>
// kernel: tpu_custom_call.1
= control target key start
LH: loop header
LB: loop body
LE: loop exit
PB: predicated region body
PF: predicated region fallthrough
CT: control target
= control target key end

     0   :  { %7 = vsyncpa [#allocation3], 0  ;;  %s306_s0 = inlined_call_operand.hbm [shape: bf16[8,16], index: 0, kind: input, shape index: {}]   ;;  %s307_s1 = inlined_call_operand.hbm [shape: f32[19,32], index: 1, kind: input, shape index: {}]   ;;  %s308_s2 = inlined_call_operand.hbm [shape: f32[8,32], index: 2, kind: output, shape index: {}]  }
   0x1   :  { %8 = vsyncpa [#allocation6], 0 }
   0x2   :  { %9 = vsyncpa [#allocation4], 0  ;;  %s239_s9 = smov [#allocation2]   ;;  %s240_s11 = smov [#allocation5]  }
   0x3   :  { %s16_s10 = sshll.u32 %s239_s9, 4  ;;  %s25_s12 = sshll.u32 %s240_s11, 4  ;;  %s17_s10 = int_to_ptr.vmem [resolvable:$true] %s16_s10  ;;  %s261_s12 = int_to_ptr.vmem [resolvable:$true] %s25_s12 }
   0x4   :  { %s167_s15 = scalar_lea.hbm %s306_s0, 64 }
   0x5   :  { %p168_p0 = scmp.ne.s32.totalorder %s306_s0, %s167_s15  ;;  %p171_p1 = scmp.lt.u32.totalorder %s167_s15, %s306_s0 }
   0x7   :  { %p173_p2 = pnand %p171_p1, %p168_p0 }
   0x9   :  { %176 = shalt.err (!%p173_p2)
}
   0xa   :  { %s177_s20 = scalar_lea.vmem %s17_s10, 64  ;;  %p182_p4 = scmp.lt.s32.totalorder %s17_s10, %s17_s10 }
   0xb   :  { %p178_p3 = scmp.ne.s32.totalorder %s17_s10, %s177_s20  ;;  %p183_p5 = scmp.lt.s32.totalorder %s177_s20, %s177_s20 }
   0xd   :  { %p184_p6 = por %p183_p5, %p182_p4 }
   0xf   :  { %p185_p7 = pnand %p184_p6, %p178_p3 }
  0x11   :  { %188 = shalt.err (!%p185_p7)
}
  0x12   :  { %19 = dma.hbm_to_vmem [thread:$0]  %s306_s0, 64, %s17_s10, [#allocation3]  }
  0x13   :  { %s189_s25 = scalar_lea.hbm %s307_s1, 384 }
  0x14   :  { %p190_p8 = scmp.ne.s32.totalorder %s307_s1, %s189_s25  ;;  %p193_p9 = scmp.lt.u32.totalorder %s189_s25, %s307_s1 }
  0x16   :  { %p195_p10 = pnand %p193_p9, %p190_p8 }
  0x18   :  { %198 = shalt.err (!%p195_p10)
}
  0x19   :  { %s199_s30 = scalar_lea.vmem %s261_s12, 384  ;;  %p204_p12 = scmp.lt.s32.totalorder %s261_s12, %s261_s12 }
  0x1a   :  { %p200_p11 = scmp.ne.s32.totalorder %s261_s12, %s199_s30  ;;  %p205_p13 = scmp.lt.s32.totalorder %s199_s30, %s199_s30 }
  0x1c   :  { %p206_p0 = por %p205_p13, %p204_p12 }
  0x1e   :  { %p207_p1 = pnand %p206_p0, %p200_p11 }
  0x20   :  { %210 = shalt.err (!%p207_p1)
}
  0x21   :  { %s241_s0 = smov 128   ;;  %s242_s3 = smov 8  }
  0x22   :  { %31 = dma.hbm_to_vmem [thread:$0]  %s307_s1, 384, %s261_s12, [#allocation6], %s241_s0, %s241_s0, %s242_s3  }
  0x23   :  { %233 = dma.done.wait [#allocation3], 64  }
  0x24   :  { %234 = vsyncadd [#allocation3], 4294967232 }
  0x25   :  { %235 = dma.done.wait [#allocation6], 384  }
  0x26   :  { %236 = vsyncadd [#allocation6], 4294966912  ;;  %v243_v0 = vmov 0.0   ;;  %vm244_vm0 = vmmov 0   ;;  %v39_v1 = vld [vmem:[#allocation5] sm:$0xff]  ;;  %v40_v2 = vld [vmem:[#allocation5 + $0x8] sm:$0xff] }
  0x27   :  { %146 = vmatprep.subr.bf16.mxu0 %v243_v0  ;;  %148 = vmatprep.mubr.msk.bf16.mxu0 %vm244_vm0, %v243_v0  ;;  %v41_v3 = vpack.c.bf16 %v40_v2, %v39_v1  ;;  %v45_v4 = vld [vmem:[#allocation2] sm:$0xf]  ;;  %vm50_vm1 = vcmask 130048   ;;  %v138_v5 = vld [vmem:[#allocation5 + $0x10] ss:$0 sm:$0xff]  ;;  %vm99_vm2 = vcmask 261120  }
  0x28   :  { %v140_v7 = vld [vmem:[#allocation5 + $0x11] ss:$0 sm:$0xff]  ;;  %v142_v15 = vld [vmem:[#allocation5 + $0x12] ss:$0 sm:$0xff]  ;;  %s245_s1 = smov [#allocation7]  }
  0x29   :  { %147 = vmatpush3.bf16.msra.mxu0 %v41_v3  ;;  %s128_s6 = sshll.u32 %s245_s1, 4  ;;  %s129_s6 = int_to_ptr.vmem [resolvable:$true] %s128_s6 }
  0x2a   :  { %s211_s7 = scalar_lea.vmem %s129_s6, 128  ;;  %p216_p3 = scmp.lt.s32.totalorder %s129_s6, %s129_s6 }
  0x2b   :  { %p212_p2 = scmp.ne.s32.totalorder %s129_s6, %s211_s7  ;;  %p217_p4 = scmp.lt.s32.totalorder %s211_s7, %s211_s7 }
  0x2c   :  { %149 = vmatmul.mubr.msk.bf16.vlgmr.msra.gmra.mrb[0].mxu0 %vm50_vm1, %v45_v4 }
  0x2d   :  { %p218_p5 = por %p217_p4, %p216_p3 }
  0x2f   :  { %p219_p6 = pnand %p218_p5, %p212_p2 }
  0xff   :  { %v88_v6 = vpop.f32.mrb[0].mxu0 }
 0x100   :  { %v89_v8 = vadd.f32 %v138_v5, %v88_v6  ;;  %v150_v9 = vpop.f32.mrb[1].mxu0 }
 0x101   :  { %v91_v10 = vpop.f32.mrb[2].mxu0 }
 0x102   :  { %v151_v11 = vpop.f32.mrb[3].mxu0  ;;  %v98_v12 = vmul.f32 %v140_v7, %v89_v8  ;;  %v141_v14 = vmul.f32 -1.442695, %v89_v8 }
 0x104   :  { %v100_v13 = vsel %vm99_vm2, %v98_v12, 0.0  ;;  %159 = vpow2.f32 %v141_v14 }
 0x105   :  { %101 = vadd.xlane.f32.xlu0 %v100_v13 }
 0x10e   :  { %v160_v19 = vpop.eup %159 }
 0x10f   :  { %v106_v20 = vadd.f32 1.0, %v160_v19 }
 0x192   :  { %v102_v16 = vpop.xlane.xlu0 %101 }
 0x193   :  { %v113_v17 = vadd.f32 %v142_v15, %v102_v16 }
 0x195   :  { %v143_v18 = vmul.f32 -1.442695, %v113_v17 }
 0x197   :  { %161 = vpow2.f32 %v143_v18 }
 0x198   :  { %163 = vrcp.f32 %v106_v20 }
 0x1a1   :  { %v162_v21 = vpop.eup %161 }
 0x1a2   :  { %v117_v22 = vadd.f32 1.0, %v162_v21  ;;  %v164_v23 = vpop.eup %163 }
 0x1a4   :  { %165 = vrcp.f32 %v117_v22 }
 0x1ae   :  { %v166_v24 = vpop.eup %165 }
 0x1af   :  { %v120_v25 = vmul.f32 %v166_v24, %v164_v23 }
 0x1b1   :  { %121 = vst.msk [vmem:[#allocation7] sm:$0xff] %vm99_vm2, %v120_v25 }
 0x1b2   :  { %222 = shalt.err (!%p219_p6)
}
 0x1b3   :  { %s223_s10 = scalar_lea.hbm %s308_s2, 128 }
 0x1b4   :  { %p224_p7 = scmp.ne.s32.totalorder %s308_s2, %s223_s10  ;;  %p227_p8 = scmp.lt.u32.totalorder %s223_s10, %s308_s2 }
 0x1b6   :  { %p229_p9 = pnand %p227_p8, %p224_p7 }
 0x1b8   :  { %232 = shalt.err (!%p229_p9)
}
 0x1b9   :  { %131 = dma.vmem_to_hbm [thread:$0]  %s129_s6, 128, %s308_s2, [#allocation4]  }
 0x1ba   :  { %237 = dma.done.wait [#allocation4], 128  }
 0x1bb   :  { %238 = vsyncadd [#allocation4], 4294967168 }
 0x1bc   :  { %135 = vsyncpa [#allocation3], 1 }
 0x1bd   :  { %136 = vsyncpa [#allocation6], 1 }
 0x1be   :  { %137 = vsyncpa [#allocation4], 1 }

</bundles_post_ra>
